<compile_context>
chip_gen: v7x
topology: tpu7x:2x2x1
jax: 0.10.0
libtpu: 0.0.40
codegen_flags: <defaults>
</compile_context>

<pallas_src>
import functools

import jax
import jax.numpy as jnp
from jax.experimental import pallas as pl
from jax.experimental.pallas import tpu as pltpu


def _mlp_kernel(x_ref, w1_ref, b1_ref, w2_ref, b2_ref, o_ref):
    """One batch tile of: softmax(sigmoid(x @ W1 + b1) @ W2 + b2, axis=-1)."""
    x = x_ref[...]            # (tb, n_in)     f32
    b1 = b1_ref[...]          # (1, n_hidden)  f32
    b2 = b2_ref[...]          # (1, n_out)     f32

    # hidden = sigmoid(x @ W1 + b1): f32 MXU matmul with f32 accumulation.
    # Sigmoid written via exp so it lowers to the (otherwise idle) EUP slot.
    h = jnp.dot(x, w1_ref[...], preferred_element_type=jnp.float32) + b1
    h = 1.0 / (1.0 + jnp.exp(-h))

    # logits = hidden @ W2 + b2
    logits = jnp.dot(h, w2_ref[...], preferred_element_type=jnp.float32) + b2

    # softmax over the feature axis (dim=1 of the [batch, n_out] tile).
    # Exact divide so every row sums to 1 up to f32 rounding (nn.Softmax
    # contract) -- the kernel is mem-bound, the divide is free.
    m = jnp.max(logits, axis=-1, keepdims=True)
    e = jnp.exp(logits - m)
    denom = jnp.sum(e, axis=-1, keepdims=True)
    o_ref[...] = (e / denom).astype(o_ref.dtype)
    # TODO(synk): n_out=16 < 128 lanes -> masked vst.msk partial stores. The
    # lane-dense fold (8 batch rows into lanes: (tb,16)->(tb//8,128)) needs a
    # sublane->lane relayout that Mosaic does not reliably lower in-kernel, so
    # it is left out; at these shapes the kernel is per-step-overhead bound.


def _round_up(x, m):
    return ((x + m - 1) // m) * m


def _pick_batch_tile(padded_b):
    """Single grid step for small/medium batches; 1024-row tiles when large.

    Each grid step costs ~0.35 us of pipeline overhead; at small batches the
    'double-buffered' DMA is a few KB and hides nothing, so one step wins.
    Only when the batch is in the thousands of rows does tiling (and letting
    v7x shard the 'parallel' axis across its two TensorCores) pay off.
    """
    if padded_b <= 2048:
        return padded_b
    return 1024


@functools.partial(jax.jit, static_argnames=("batch_tile",))
def my_first_model_forward(x, w1, b1, w2, b2, *, batch_tile=None):
    B, n_in = x.shape
    n_hidden = w1.shape[1]
    n_out = w2.shape[1]

    # Pad only to the f32 sublane multiple (8 rows), never to a large tile.
    padded_b = _round_up(B, 8)
    tb = _pick_batch_tile(padded_b) if batch_tile is None else batch_tile
    if padded_b != B:
        x = jnp.pad(x, ((0, padded_b - B), (0, 0)))

    # Ragged last tile (when tb does not divide padded_b for very large B) is
    # handled by Pallas: OOB input rows are garbage but row-local, OOB output
    # writes are masked, and we slice back to B below.
    grid = (pl.cdiv(padded_b, tb),)

    flops = 2 * padded_b * (n_in * n_hidden + n_hidden * n_out)
    transcendentals = padded_b * (n_hidden + n_out)
    bytes_accessed = 4 * (x.size + w1.size + b1.size + w2.size + b2.size
                          + padded_b * n_out)

    out = pl.pallas_call(
        _mlp_kernel,
        out_shape=jax.ShapeDtypeStruct((padded_b, n_out), jnp.float32),
        grid_spec=pltpu.PrefetchScalarGridSpec(
            num_scalar_prefetch=0,
            grid=grid,
            in_specs=[
                # x tile: pipelined over the (batch) grid axis.
                pl.BlockSpec((tb, n_in), lambda i: (i, 0)),
                # Weights/biases: constant index_map -> stay resident in VMEM.
                pl.BlockSpec((n_in, n_hidden), lambda i: (0, 0)),
                pl.BlockSpec((1, n_hidden), lambda i: (0, 0)),
                pl.BlockSpec((n_hidden, n_out), lambda i: (0, 0)),
                pl.BlockSpec((1, n_out), lambda i: (0, 0)),
            ],
            out_specs=pl.BlockSpec((tb, n_out), lambda i: (i, 0)),
        ),
        compiler_params=pltpu.CompilerParams(
            dimension_semantics=("parallel",),
        ),
        cost_estimate=pl.CostEstimate(
            flops=flops,
            transcendentals=transcendentals,
            bytes_accessed=bytes_accessed,
        ),
    )(x, w1, b1, w2, b2)

    return out[:B] if padded_b != B else out


def init_params(key, n_input, n_hidden_unit, n_output):
    """PyTorch nn.Linear-style init U(-1/sqrt(fan_in), 1/sqrt(fan_in)).

    Weights are stored as [in_features, out_features] (transposed vs. PyTorch)
    so the kernel computes x @ W + b directly.
    """
    k1, k2, k3, k4 = jax.random.split(key, 4)
    bound1 = 1.0 / jnp.sqrt(n_input)
    bound2 = 1.0 / jnp.sqrt(n_hidden_unit)
    w1 = jax.random.uniform(k1, (n_input, n_hidden_unit), jnp.float32, -bound1, bound1)
    b1 = jax.random.uniform(k2, (1, n_hidden_unit), jnp.float32, -bound1, bound1)
    w2 = jax.random.uniform(k3, (n_hidden_unit, n_output), jnp.float32, -bound2, bound2)
    b2 = jax.random.uniform(k4, (1, n_output), jnp.float32, -bound2, bound2)
    return w1, b1, w2, b2


def reference_forward(x, w1, b1, w2, b2):
    """Plain f32 JAX forward mirroring the PyTorch module."""
    h = jax.nn.sigmoid(jnp.dot(x, w1) + b1)
    logits = jnp.dot(h, w2) + b2
    return jax.nn.softmax(logits, axis=1)


if __name__ == "__main__":
    # Small shapes consistent with the module: one Linear(32->64), sigmoid,
    # Linear(64->16), softmax over dim=1, batch of 16.
    batch, n_input, n_hidden_unit, n_output = 16, 32, 64, 16

    key = jax.random.PRNGKey(0)
    kx, kp = jax.random.split(key)
    x = jax.random.normal(kx, (batch, n_input), dtype=jnp.float32)
    w1, b1, w2, b2 = init_params(kp, n_input, n_hidden_unit, n_output)

    out = jax.block_until_ready(my_first_model_forward(x, w1, b1, w2, b2))
    ref = reference_forward(x, w1, b1, w2, b2)

    assert out.shape == (batch, n_output)
    # f32 end-to-end: only MXU-pass rounding separates kernel from reference.
    assert bool(jnp.allclose(out, ref, atol=2e-3, rtol=2e-3))
    # Exact softmax divide -> rows sum to 1 up to f32 rounding.
    assert bool(jnp.allclose(jnp.sum(out, axis=1), jnp.ones((batch,)), atol=1e-3))

    print("KERNEL_OK")
</pallas_src>

<mosaic_0001>
module attributes {stable_mosaic.version = 11 : i64} {
  func.func @_mlp_kernel(%arg0: i32, %arg1: memref<16x32xf32, #tpu.memory_space<vmem>>, %arg2: memref<32x64xf32, #tpu.memory_space<vmem>>, %arg3: memref<1x64xf32, #tpu.memory_space<vmem>>, %arg4: memref<64x16xf32, #tpu.memory_space<vmem>>, %arg5: memref<1x16xf32, #tpu.memory_space<vmem>>, %arg6: memref<16x16xf32, #tpu.memory_space<vmem>>) attributes {dimension_semantics = [#tpu.dimension_semantics<parallel>], iteration_bounds = array<i64: 1>, scalar_prefetch = 0 : i64, scratch_operands = 0 : i64, tpu.core_type = #tpu.core_type<tc>, window_params = [{transform_indices = @transform_0, window_bounds = array<i64: 16, 32>}, {pipeline_mode = #tpu.pipeline_mode<synchronous>, transform_indices = @transform_1, window_bounds = array<i64: 32, 64>}, {pipeline_mode = #tpu.pipeline_mode<synchronous>, transform_indices = @transform_2, window_bounds = array<i64: 1, 64>}, {pipeline_mode = #tpu.pipeline_mode<synchronous>, transform_indices = @transform_3, window_bounds = array<i64: 64, 16>}, {pipeline_mode = #tpu.pipeline_mode<synchronous>, transform_indices = @transform_4, window_bounds = array<i64: 1, 16>}, {transform_indices = @transform_5, window_bounds = array<i64: 16, 16>}]} {
    %c0 = arith.constant 0 : index
    %c0_0 = arith.constant 0 : index
    %0 = vector.load %arg1[%c0, %c0_0] : memref<16x32xf32, #tpu.memory_space<vmem>>, vector<16x32xf32>
    %c0_1 = arith.constant 0 : index
    %c0_2 = arith.constant 0 : index
    %1 = vector.load %arg3[%c0_1, %c0_2] : memref<1x64xf32, #tpu.memory_space<vmem>>, vector<1x64xf32>
    %c0_3 = arith.constant 0 : index
    %c0_4 = arith.constant 0 : index
    %2 = vector.load %arg5[%c0_3, %c0_4] : memref<1x16xf32, #tpu.memory_space<vmem>>, vector<1x16xf32>
    %c0_5 = arith.constant 0 : index
    %c0_6 = arith.constant 0 : index
    %3 = vector.load %arg2[%c0_5, %c0_6] : memref<32x64xf32, #tpu.memory_space<vmem>>, vector<32x64xf32>
    %cst = arith.constant dense<0.000000e+00> : vector<16x64xf32>
    %4 = tpu.matmul %0, %3, %cst {dimension_numbers = #tpu.dot_dimension_numbers<[1], [0], [0], [1], [0, 0, 1, 1], [], []>} : vector<16x32xf32>, vector<32x64xf32>, vector<16x64xf32> -> vector<16x64xf32>
    %5 = vector.broadcast %1 : vector<1x64xf32> to vector<16x64xf32>
    %6 = arith.addf %4, %5 : vector<16x64xf32>
    %cst_7 = arith.constant 0.000000e+00 : f32
    %7 = vector.broadcast %cst_7 : f32 to vector<16x64xf32>
    %8 = arith.subf %7, %6 : vector<16x64xf32>
    %9 = math.exp %8 : vector<16x64xf32>
    %cst_8 = arith.constant 1.000000e+00 : f32
    %10 = vector.broadcast %cst_8 : f32 to vector<16x64xf32>
    %11 = arith.addf %10, %9 : vector<16x64xf32>
    %cst_9 = arith.constant 1.000000e+00 : f32
    %12 = vector.broadcast %cst_9 : f32 to vector<16x64xf32>
    %13 = arith.divf %12, %11 : vector<16x64xf32>
    %c0_10 = arith.constant 0 : index
    %c0_11 = arith.constant 0 : index
    %14 = vector.load %arg4[%c0_10, %c0_11] : memref<64x16xf32, #tpu.memory_space<vmem>>, vector<64x16xf32>
    %cst_12 = arith.constant dense<0.000000e+00> : vector<16x16xf32>
    %15 = tpu.matmul %13, %14, %cst_12 {dimension_numbers = #tpu.dot_dimension_numbers<[1], [0], [0], [1], [0, 0, 1, 1], [], []>} : vector<16x64xf32>, vector<64x16xf32>, vector<16x16xf32> -> vector<16x16xf32>
    %16 = vector.broadcast %2 : vector<1x16xf32> to vector<16x16xf32>
    %17 = arith.addf %15, %16 : vector<16x16xf32>
    %cst_13 = arith.constant dense<0xFF800000> : vector<16xf32>
    %18 = vector.multi_reduction <maximumf>, %17, %cst_13 [1] : vector<16x16xf32> to vector<16xf32>
    %19 = vector.shape_cast %18 : vector<16xf32> to vector<16x1xf32>
    %20 = vector.broadcast %19 : vector<16x1xf32> to vector<16x16xf32>
    %21 = arith.subf %17, %20 : vector<16x16xf32>
    %22 = math.exp %21 : vector<16x16xf32>
    %cst_14 = arith.constant dense<0.000000e+00> : vector<16xf32>
    %23 = vector.multi_reduction <add>, %22, %cst_14 [1] : vector<16x16xf32> to vector<16xf32>
    %24 = vector.shape_cast %23 : vector<16xf32> to vector<16x1xf32>
    %25 = vector.broadcast %24 : vector<16x1xf32> to vector<16x16xf32>
    %26 = arith.divf %22, %25 : vector<16x16xf32>
    %c0_15 = arith.constant 0 : index
    %c0_16 = arith.constant 0 : index
    %27 = vector.load %arg6[%c0_15, %c0_16] : memref<16x16xf32, #tpu.memory_space<vmem>>, vector<16x16xf32>
    tpu.vector_store %arg6[%c0_15, %c0_16], %26 {strides = array<i32>} : memref<16x16xf32, #tpu.memory_space<vmem>>, vector<16x16xf32>,
    return
  }
  func.func @transform_0(%arg0: i32) -> (i32, i32) {
    %c0_i32 = arith.constant 0 : i32
    %c0_i32_0 = arith.constant 0 : i32
    return %arg0, %c0_i32 : i32, i32
  }
  func.func @transform_1(%arg0: i32) -> (i32, i32) {
    %c0_i32 = arith.constant 0 : i32
    %c0_i32_0 = arith.constant 0 : i32
    %c0_i32_1 = arith.constant 0 : i32
    return %c0_i32, %c0_i32_0 : i32, i32
  }
  func.func @transform_2(%arg0: i32) -> (i32, i32) {
    %c0_i32 = arith.constant 0 : i32
    %c0_i32_0 = arith.constant 0 : i32
    %c0_i32_1 = arith.constant 0 : i32
    return %c0_i32, %c0_i32_0 : i32, i32
  }
  func.func @transform_3(%arg0: i32) -> (i32, i32) {
    %c0_i32 = arith.constant 0 : i32
    %c0_i32_0 = arith.constant 0 : i32
    %c0_i32_1 = arith.constant 0 : i32
    return %c0_i32, %c0_i32_0 : i32, i32
  }
  func.func @transform_4(%arg0: i32) -> (i32, i32) {
    %c0_i32 = arith.constant 0 : i32
    %c0_i32_0 = arith.constant 0 : i32
    %c0_i32_1 = arith.constant 0 : i32
    return %c0_i32, %c0_i32_0 : i32, i32
  }
  func.func @transform_5(%arg0: i32) -> (i32, i32) {
    %c0_i32 = arith.constant 0 : i32
    %c0_i32_0 = arith.constant 0 : i32
    return %arg0, %c0_i32 : i32, i32
  }
}

</mosaic_0001>

<bundles_post_ra>
// kernel: my_first_model_forward.1
= control target key start
LH: loop header
LB: loop body
LE: loop exit
PB: predicated region body
PF: predicated region fallthrough
CT: control target
= control target key end

     0   :  { %vm35_vm0 = vcmask 261120   ;;  %s484_s0 = inlined_call_operand.vmem [shape: f32[16,32], index: 0, kind: input, shape index: {}]   ;;  %s485_s1 = inlined_call_operand.vmem [shape: f32[32,64], index: 1, kind: input, shape index: {}]   ;;  %s486_s2 = inlined_call_operand.vmem [shape: f32[1,64], index: 2, kind: input, shape index: {}]   ;;  %s487_s3 = inlined_call_operand.vmem [shape: f32[64,16], index: 3, kind: input, shape index: {}]   ;;  %s488_s4 = inlined_call_operand.vmem [shape: f32[1,16], index: 4, kind: input, shape index: {}]   ;;  %s489_s5 = inlined_call_operand.hbm [shape: f32[16,16], index: 5, kind: output, shape index: {}]  }
   0x1   :  { %v25_v0 = vld [vmem:[%s485_s1] sm:$0xff]  ;;  %v26_v1 = vld [vmem:[%s485_s1 + $0x8] sm:$0xff]  ;;  %v27_v2 = vld [vmem:[%s485_s1 + $0x10] sm:$0xff] }
   0x2   :  { %v318_v3 = vpack.c.bf16 %v26_v1, %v25_v0  ;;  %v28_v4 = vld [vmem:[%s485_s1 + $0x18] sm:$0xff]  ;;  %v21_v5 = vld [vmem:[%s484_s0] sm:$0xff] }
   0x3   :  { %v322_v6 = vpack.c.bf16 %v28_v4, %v27_v2  ;;  %296 = vmatprep.mubr.msk.f32.mxu0 %vm35_vm0, %v21_v5 }
   0x4   :  { %10 = vsyncpa [#allocation3], 0  ;;  %319 = vmatprep.subr.bf16.mxu0 %v318_v3  ;;  %v22_v7 = vld [vmem:[%s484_s0 + $0x8] sm:$0xff]  ;;  %v129_v8 = vld [vmem:[%s487_s3] sm:$0xff]  ;;  %vm143_vm1 = vcmask 523264   ;;  %vm225_vm2 = vcmask 130048  }
   0x5   :  { %321 = vmatpush3.bf16.msra.mxu0 %v318_v3  ;;  %v130_v9 = vld [vmem:[%s487_s3 + $0x8] sm:$0xff]  ;;  %v131_v11 = vld [vmem:[%s487_s3 + $0x10] sm:$0xff]  ;;  %v132_v12 = vld [vmem:[%s487_s3 + $0x18] sm:$0xff] }
   0x6   :  { %323 = vmatprep.subr.bf16.mxu0 %v322_v6  ;;  %v326_v10 = vpack.c.bf16 %v130_v9, %v129_v8  ;;  %v330_v13 = vpack.c.bf16 %v132_v12, %v131_v11  ;;  %v133_v14 = vld [vmem:[%s487_s3 + $0x20] sm:$0xff]  ;;  %v134_v15 = vld [vmem:[%s487_s3 + $0x28] sm:$0xff]  ;;  %v135_v16 = vld [vmem:[%s487_s3 + $0x30] sm:$0xff] }
   0x7   :  { %v334_v17 = vpack.c.bf16 %v134_v15, %v133_v14  ;;  %v136_v18 = vld [vmem:[%s487_s3 + $0x38] sm:$0xff]  ;;  %v266_v20 = vld [vmem:[%s486_s2] ss:$0 sm:$0xff] }
   0x8   :  { %327 = vmatprep.subr.bf16.mxu1 %v326_v10  ;;  %v338_v19 = vpack.c.bf16 %v136_v18, %v135_v16  ;;  %v269_v35 = vld [vmem:[%s488_s4] ss:$0 sm:$0xff]  ;;  %s385_s4 = smov [#allocation2]  }
   0x9   :  { %325 = vmatpush3.bf16.msra.mxu0 %v322_v6  ;;  %329 = vmatpush3.bf16.msra.mxu1 %v326_v10  ;;  %s255_s21 = sshll.u32 %s385_s4, 4  ;;  %s256_s21 = int_to_ptr.vmem [resolvable:$true] %s255_s21 }
   0xa   :  { %331 = vmatprep.subr.bf16.mxu1 %v330_v13  ;;  %s361_s22 = scalar_lea.vmem %s256_s21, 256  ;;  %p366_p1 = scmp.lt.s32.totalorder %s256_s21, %s256_s21 }
   0xb   :  { %p362_p0 = scmp.ne.s32.totalorder %s256_s21, %s361_s22  ;;  %p367_p2 = scmp.lt.s32.totalorder %s361_s22, %s361_s22 }
   0xc   :  { %297 = vmatmul.mubr.msk.f32.vlgmr.msra.gmra.mrb[0].mxu0 %vm35_vm0, %v22_v7 }
   0xd   :  { %333 = vmatpush3.bf16.msra.mxu1 %v330_v13  ;;  %p368_p3 = por %p367_p2, %p366_p1 }
   0xe   :  { %335 = vmatprep.subr.bf16.mxu1 %v334_v17 }
   0xf   :  { %p369_p4 = pnand %p368_p3, %p362_p0 }
  0x11   :  { %337 = vmatpush3.bf16.msra.mxu1 %v334_v17 }
  0x12   :  { %339 = vmatprep.subr.bf16.mxu1 %v338_v19 }
  0x15   :  { %341 = vmatpush3.bf16.msra.mxu1 %v338_v19 }
  0xdf   :  { %v298_v21 = vpop.f32.mrb[0].mxu0 }
  0xe0   :  { %v114_v22 = vadd.f32 %v298_v21, %v266_v20  ;;  %v108_v23 = vpop.f32.mrb[1].mxu0 }
  0xe1   :  { %v109_v24 = vadd.f32 %v266_v20, %v108_v23 }
  0xe2   :  { %v118_v25 = vsub.f32 0.0, %v114_v22 }
  0xe3   :  { %v117_v26 = vsub.f32 0.0, %v109_v24 }
  0xe4   :  { %v121_v27 = vmul.f32 1.442695, %v118_v25 }
  0xe5   :  { %v119_v28 = vmul.f32 1.442695, %v117_v26 }
  0xe6   :  { %345 = vpow2.f32 %v121_v27 }
  0xe7   :  { %347 = vpow2.f32 %v119_v28 }
  0xf0   :  { %v346_v29 = vpop.eup %345 }
  0xf1   :  { %v348_v30 = vpop.eup %347  ;;  %v124_v31 = vadd.f32 1.0, %v346_v29 }
  0xf2   :  { %v123_v32 = vadd.f32 1.0, %v348_v30 }
  0xf4   :  { %349 = vrcp.f32 %v123_v32 }
  0xf5   :  { %351 = vrcp.f32 %v124_v31 }
  0xfe   :  { %v350_v33 = vpop.eup %349 }
  0xff   :  { %v352_v34 = vpop.eup %351  ;;  %315 = vmatprep.mubr.msk.f32.mxu1 %vm143_vm1, %v350_v33 }
 0x100   :  { %316 = vmatmul.mubr.msk.f32.vlgmr.msra.gmra.mrb[0].mxu1 %vm143_vm1, %v352_v34 }
 0x1d3   :  { %v317_v36 = vpop.f32.mrb[0].mxu1 }
 0x1d4   :  { %v216_v37 = vpop.f32.mrb[1].mxu1  ;;  %v222_v39 = vadd.f32 %v317_v36, %v269_v35 }
 0x1d5   :  { %v217_v38 = vadd.f32 %v269_v35, %v216_v37 }
 0x1d6   :  { %v229_v41 = vsel %vm225_vm2, %v222_v39, -inf }
 0x1d7   :  { %v226_v40 = vsel %vm225_vm2, %v217_v38, -inf }
 0x1d8   :  { %227 = vmax.xlane.f32.xlu0 %v226_v40 }
 0x1dc   :  { %230 = vmax.xlane.f32.xlu0 %v229_v41 }
 0x265   :  { %v228_v42 = vpop.xlane.xlu0 %227 }
 0x266   :  { %v232_v43 = vsub.f32 %v217_v38, %v228_v42 }
 0x268   :  { %v234_v44 = vmul.f32 1.442695, %v232_v43 }
 0x269   :  { %v231_v45 = vpop.xlane.xlu0 %230 }
 0x26a   :  { %353 = vpow2.f32 %v234_v44  ;;  %v233_v46 = vsub.f32 %v222_v39, %v231_v45 }
 0x26c   :  { %v236_v47 = vmul.f32 1.442695, %v233_v46 }
 0x26e   :  { %355 = vpow2.f32 %v236_v47 }
 0x274   :  { %v354_v48 = vpop.eup %353 }
 0x275   :  { %v238_v49 = vsel %vm225_vm2, %v354_v48, 0.0 }
 0x276   :  { %239 = vadd.xlane.f32.xlu1 %v238_v49 }
 0x278   :  { %v356_v50 = vpop.eup %355 }
 0x279   :  { %v241_v51 = vsel %vm225_vm2, %v356_v50, 0.0 }
 0x27a   :  { %242 = vadd.xlane.f32.xlu1 %v241_v51 }
 0x303   :  { %v240_v52 = vpop.xlane.xlu1 %239 }
 0x304   :  { %357 = vrcp.f32 %v240_v52 }
 0x307   :  { %v243_v53 = vpop.xlane.xlu1 %242 }
 0x308   :  { %359 = vrcp.f32 %v243_v53 }
 0x30e   :  { %v358_v54 = vpop.eup %357 }
 0x30f   :  { %v245_v55 = vmul.f32 %v358_v54, %v354_v48 }
 0x311   :  { %248 = vst.msk [vmem:[#allocation2] sm:$0xff] %vm225_vm2, %v245_v55 }
 0x312   :  { %v360_v56 = vpop.eup %359 }
 0x313   :  { %v247_v57 = vmul.f32 %v360_v56, %v356_v50 }
 0x315   :  { %249 = vst.msk [vmem:[#allocation2 + $0x8] sm:$0xff] %vm225_vm2, %v247_v57 }
 0x316   :  { %372 = shalt.err (!%p369_p4)
}
 0x317   :  { %s373_s25 = scalar_lea.hbm %s489_s5, 256 }
 0x318   :  { %p374_p5 = scmp.ne.s32.totalorder %s489_s5, %s373_s25  ;;  %p377_p6 = scmp.lt.u32.totalorder %s373_s25, %s489_s5 }
 0x31a   :  { %p379_p7 = pnand %p377_p6, %p374_p5 }
 0x31c   :  { %382 = shalt.err (!%p379_p7)
}
 0x31d   :  { %s386_s30 = smov 128   ;;  %s387_s6 = smov 8  }
 0x31e   :  { %261 = dma.vmem_to_hbm [thread:$0]  %s256_s21, 256, %s489_s5, [#allocation3], %s386_s30, %s386_s30, %s387_s6  }
 0x31f   :  { %383 = dma.done.wait [#allocation3], 256  }
 0x320   :  { %384 = vsyncadd [#allocation3], 4294967040 }
 0x321   :  { %265 = vsyncpa [#allocation3], 1 }

</bundles_post_ra>
